<compile_context>
chip_gen: v5e
topology: v5e:2x2
jax: 0.10.0
libtpu: 0.0.40
codegen_flags: <defaults>
</compile_context>

<pallas_src>
import functools

import jax
import jax.numpy as jnp
from jax.experimental import pallas as pl
from jax.experimental.pallas import tpu as pltpu


def _rnn_classifier_kernel(T, Bp, x_ref, wih_t_ref, whh_t_ref, b_ref,
                           wout_t_ref, bout_ref, out_ref, h_all):
    H = whh_t_ref.shape[0]

    # ---- Prologue: time-independent input projection (one MXU matmul). ----
    # h_all first holds pre_x[t] = x_t @ W_ih^T + (b_ih + b_hh) for every
    # timestep; the serial loop overwrites each (Bp, H) slab with h_t in place.
    h_all[...] = (jnp.dot(x_ref[...], wih_t_ref[...],
                          preferred_element_type=jnp.float32) + b_ref[...])

    whh_t = whh_t_ref[...]                       # (H, H), kept resident in vregs

    # ---- Serial recurrence: the only time-dependent work (1 matmul + tanh). --
    def step(t, h_prev):
        row = pl.multiple_of(t * Bp, Bp)         # sublane-aligned (Bp % 8 == 0)
        pre_t = h_all[pl.ds(row, Bp), :]         # (Bp, H)
        h_new = jnp.tanh(pre_t + jnp.dot(h_prev, whh_t,
                                         preferred_element_type=jnp.float32))
        h_all[pl.ds(row, Bp), :] = h_new
        return h_new

    h0 = jnp.zeros((Bp, H), jnp.float32)
    jax.lax.fori_loop(0, T, step, h0, unroll=True)

    # ---- Epilogue: output projection over all timesteps, single store. ----
    logits = (jnp.dot(h_all[...], wout_t_ref[...],
                      preferred_element_type=jnp.float32) + bout_ref[...])
    out_ref[...] = logits.astype(out_ref.dtype)


def sorting_classifier_forward(inputs, params):
    """inputs: (T, B, D) float32 (seq-major).  Returns logits (T, B, L)."""
    T, B, D = inputs.shape
    w_ih, w_hh = params["w_ih"], params["w_hh"]
    b_ih, b_hh = params["b_ih"], params["b_hh"]
    w_out, b_out = params["w_out"], params["b_out"]
    H = w_ih.shape[0]
    L = w_out.shape[0]

    # Pad batch to a multiple of 8 for sublane alignment (row-wise ops in the
    # batch dim => padded rows are mathematically inert for the real rows).
    Bp = max(8, ((B + 7) // 8) * 8)
    if Bp != B:
        inputs = jnp.pad(inputs, ((0, 0), (0, Bp - B), (0, 0)))

    # Layout-only glue (outside the kernel): flatten time into the sublane dim,
    # pre-transpose weights for plain (M,K)@(K,N) matmuls, pre-sum the two
    # recurrence biases, lift biases to (1, N) rows.
    x2 = inputs.reshape(T * Bp, D)
    w_ih_t = w_ih.T                              # (D, H)
    w_hh_t = w_hh.T                              # (H, H)
    w_out_t = w_out.T                            # (H, L)
    b2 = (b_ih + b_hh).reshape(1, H)
    b_out2 = b_out.reshape(1, L)

    grid_spec = pltpu.PrefetchScalarGridSpec(
        num_scalar_prefetch=0,
        grid=(1,),                               # single invocation; time loop is in-kernel
        in_specs=[
            pl.BlockSpec((T * Bp, D), lambda i: (0, 0)),   # flattened inputs
            pl.BlockSpec((D, H), lambda i: (0, 0)),        # W_ih^T
            pl.BlockSpec((H, H), lambda i: (0, 0)),        # W_hh^T
            pl.BlockSpec((1, H), lambda i: (0, 0)),        # b_ih + b_hh
            pl.BlockSpec((H, L), lambda i: (0, 0)),        # W_out^T
            pl.BlockSpec((1, L), lambda i: (0, 0)),        # b_out
        ],
        out_specs=pl.BlockSpec((T * Bp, L), lambda i: (0, 0)),
        scratch_shapes=[pltpu.VMEM((T * Bp, H), jnp.float32)],
    )

    kernel = functools.partial(_rnn_classifier_kernel, T, Bp)
    logits2 = pl.pallas_call(
        kernel,
        out_shape=jax.ShapeDtypeStruct((T * Bp, L), jnp.float32),
        grid_spec=grid_spec,
        compiler_params=pltpu.CompilerParams(
            dimension_semantics=("arbitrary",)),
    )(x2, w_ih_t, w_hh_t, b2, w_out_t, b_out2)

    return logits2.reshape(T, Bp, L)[:, :B, :]


def _reference_forward(inputs, params):
    """Pure-JAX reference (lax.scan) mirroring the PyTorch semantics."""
    w_ih, w_hh = params["w_ih"], params["w_hh"]
    b_ih, b_hh = params["b_ih"], params["b_hh"]
    w_out, b_out = params["w_out"], params["b_out"]
    B = inputs.shape[1]
    H = w_ih.shape[0]

    def step(h, x_t):
        h_new = jnp.tanh(x_t @ w_ih.T + b_ih + h @ w_hh.T + b_hh)
        return h_new, h_new

    h0 = jnp.zeros((B, H), jnp.float32)
    _, encoded = jax.lax.scan(step, h0, inputs)       # (T, B, H)
    return encoded @ w_out.T + b_out                   # (T, B, L)


if __name__ == "__main__":
    # Small shapes consistent with the module: sequence_length L = 8 (also the
    # number of timesteps), batch B = 4, input features D = 16, hidden H = 32.
    T = 8
    B = 4
    D = 16
    H = 32
    L = T  # nn.Linear(hidden_size, sequence_length)

    key = jax.random.PRNGKey(0)
    k_x, k1, k2, k3, k4, k5, k6 = jax.random.split(key, 7)

    inputs = jax.random.normal(k_x, (T, B, D), dtype=jnp.float32)
    params = {
        "w_ih":  0.1 * jax.random.normal(k1, (H, D), dtype=jnp.float32),
        "w_hh":  0.1 * jax.random.normal(k2, (H, H), dtype=jnp.float32),
        "b_ih":  0.1 * jax.random.normal(k3, (H,),   dtype=jnp.float32),
        "b_hh":  0.1 * jax.random.normal(k4, (H,),   dtype=jnp.float32),
        "w_out": 0.1 * jax.random.normal(k5, (L, H), dtype=jnp.float32),
        "b_out": 0.1 * jax.random.normal(k6, (L,),   dtype=jnp.float32),
    }

    logits = jax.jit(sorting_classifier_forward)(inputs, params)
    logits = jax.block_until_ready(logits)

    ref = _reference_forward(inputs, params)
    assert logits.shape == (T, B, L)
    assert jnp.allclose(logits, ref, atol=1e-5, rtol=1e-5), "mismatch vs reference"

    print("KERNEL_OK")
</pallas_src>

<mosaic_0001>
module attributes {stable_mosaic.version = 11 : i64} {
  func.func @_rnn_classifier_kernel(%arg0: i32, %arg1: memref<64x16xf32, #tpu.memory_space<vmem>>, %arg2: memref<16x32xf32, #tpu.memory_space<vmem>>, %arg3: memref<32x32xf32, #tpu.memory_space<vmem>>, %arg4: memref<1x32xf32, #tpu.memory_space<vmem>>, %arg5: memref<32x8xf32, #tpu.memory_space<vmem>>, %arg6: memref<1x8xf32, #tpu.memory_space<vmem>>, %arg7: memref<64x8xf32, #tpu.memory_space<vmem>>, %arg8: memref<64x32xf32, #tpu.memory_space<vmem>>) attributes {dimension_semantics = [#tpu.dimension_semantics<arbitrary>], iteration_bounds = array<i64: 1>, scalar_prefetch = 0 : i64, scratch_operands = 1 : i64, tpu.core_type = #tpu.core_type<tc>, window_params = [{pipeline_mode = #tpu.pipeline_mode<synchronous>, transform_indices = @transform_0, window_bounds = array<i64: 64, 16>}, {pipeline_mode = #tpu.pipeline_mode<synchronous>, transform_indices = @transform_1, window_bounds = array<i64: 16, 32>}, {pipeline_mode = #tpu.pipeline_mode<synchronous>, transform_indices = @transform_2, window_bounds = array<i64: 32, 32>}, {pipeline_mode = #tpu.pipeline_mode<synchronous>, transform_indices = @transform_3, window_bounds = array<i64: 1, 32>}, {pipeline_mode = #tpu.pipeline_mode<synchronous>, transform_indices = @transform_4, window_bounds = array<i64: 32, 8>}, {pipeline_mode = #tpu.pipeline_mode<synchronous>, transform_indices = @transform_5, window_bounds = array<i64: 1, 8>}, {pipeline_mode = #tpu.pipeline_mode<synchronous>, transform_indices = @transform_6, window_bounds = array<i64: 64, 8>}]} {
    %c0 = arith.constant 0 : index
    %c0_0 = arith.constant 0 : index
    %0 = vector.load %arg1[%c0, %c0_0] : memref<64x16xf32, #tpu.memory_space<vmem>>, vector<64x16xf32>
    %c0_1 = arith.constant 0 : index
    %c0_2 = arith.constant 0 : index
    %1 = vector.load %arg2[%c0_1, %c0_2] : memref<16x32xf32, #tpu.memory_space<vmem>>, vector<16x32xf32>
    %cst = arith.constant dense<0.000000e+00> : vector<64x32xf32>
    %2 = tpu.matmul %0, %1, %cst {dimension_numbers = #tpu.dot_dimension_numbers<[1], [0], [0], [1], [0, 0, 1, 1], [], []>} : vector<64x16xf32>, vector<16x32xf32>, vector<64x32xf32> -> vector<64x32xf32>
    %c0_3 = arith.constant 0 : index
    %c0_4 = arith.constant 0 : index
    %3 = vector.load %arg4[%c0_3, %c0_4] : memref<1x32xf32, #tpu.memory_space<vmem>>, vector<1x32xf32>
    %4 = vector.broadcast %3 : vector<1x32xf32> to vector<64x32xf32>
    %5 = arith.addf %2, %4 : vector<64x32xf32>
    %c0_5 = arith.constant 0 : index
    %c0_6 = arith.constant 0 : index
    %6 = vector.load %arg8[%c0_5, %c0_6] : memref<64x32xf32, #tpu.memory_space<vmem>>, vector<64x32xf32>
    tpu.vector_store %arg8[%c0_5, %c0_6], %5 {strides = array<i32>} : memref<64x32xf32, #tpu.memory_space<vmem>>, vector<64x32xf32>,
    %c0_7 = arith.constant 0 : index
    %c0_8 = arith.constant 0 : index
    %7 = vector.load %arg3[%c0_7, %c0_8] : memref<32x32xf32, #tpu.memory_space<vmem>>, vector<32x32xf32>
    %cst_9 = arith.constant 0.000000e+00 : f32
    %8 = vector.broadcast %cst_9 : f32 to vector<8x32xf32>
    %c0_i32 = arith.constant 0 : i32
    %c8_i32 = arith.constant 8 : i32
    %9 = arith.muli %c0_i32, %c8_i32 : i32
    %10 = tpu.assume_multiple %9, 8 : i32
    %11 = arith.index_cast %10 : i32 to index
    %c0_10 = arith.constant 0 : index
    %12 = vector.load %arg8[%11, %c0_10] : memref<64x32xf32, #tpu.memory_space<vmem>>, vector<8x32xf32>
    %cst_11 = arith.constant dense<0.000000e+00> : vector<8x32xf32>
    %13 = tpu.matmul %8, %7, %cst_11 {dimension_numbers = #tpu.dot_dimension_numbers<[1], [0], [0], [1], [0, 0, 1, 1], [], []>} : vector<8x32xf32>, vector<32x32xf32>, vector<8x32xf32> -> vector<8x32xf32>
    %14 = arith.addf %12, %13 : vector<8x32xf32>
    %15 = math.tanh %14 : vector<8x32xf32>
    %16 = arith.index_cast %10 : i32 to index
    %c0_12 = arith.constant 0 : index
    %17 = vector.load %arg8[%16, %c0_12] : memref<64x32xf32, #tpu.memory_space<vmem>>, vector<8x32xf32>
    tpu.vector_store %arg8[%16, %c0_12], %15 {strides = array<i32>} : memref<64x32xf32, #tpu.memory_space<vmem>>, vector<8x32xf32>,
    %c1_i32 = arith.constant 1 : i32
    %c8_i32_13 = arith.constant 8 : i32
    %18 = arith.muli %c1_i32, %c8_i32_13 : i32
    %19 = tpu.assume_multiple %18, 8 : i32
    %20 = arith.index_cast %19 : i32 to index
    %c0_14 = arith.constant 0 : index
    %21 = vector.load %arg8[%20, %c0_14] : memref<64x32xf32, #tpu.memory_space<vmem>>, vector<8x32xf32>
    %cst_15 = arith.constant dense<0.000000e+00> : vector<8x32xf32>
    %22 = tpu.matmul %15, %7, %cst_15 {dimension_numbers = #tpu.dot_dimension_numbers<[1], [0], [0], [1], [0, 0, 1, 1], [], []>} : vector<8x32xf32>, vector<32x32xf32>, vector<8x32xf32> -> vector<8x32xf32>
    %23 = arith.addf %21, %22 : vector<8x32xf32>
    %24 = math.tanh %23 : vector<8x32xf32>
    %25 = arith.index_cast %19 : i32 to index
    %c0_16 = arith.constant 0 : index
    %26 = vector.load %arg8[%25, %c0_16] : memref<64x32xf32, #tpu.memory_space<vmem>>, vector<8x32xf32>
    tpu.vector_store %arg8[%25, %c0_16], %24 {strides = array<i32>} : memref<64x32xf32, #tpu.memory_space<vmem>>, vector<8x32xf32>,
    %c2_i32 = arith.constant 2 : i32
    %c8_i32_17 = arith.constant 8 : i32
    %27 = arith.muli %c2_i32, %c8_i32_17 : i32
    %28 = tpu.assume_multiple %27, 8 : i32
    %29 = arith.index_cast %28 : i32 to index
    %c0_18 = arith.constant 0 : index
    %30 = vector.load %arg8[%29, %c0_18] : memref<64x32xf32, #tpu.memory_space<vmem>>, vector<8x32xf32>
    %cst_19 = arith.constant dense<0.000000e+00> : vector<8x32xf32>
    %31 = tpu.matmul %24, %7, %cst_19 {dimension_numbers = #tpu.dot_dimension_numbers<[1], [0], [0], [1], [0, 0, 1, 1], [], []>} : vector<8x32xf32>, vector<32x32xf32>, vector<8x32xf32> -> vector<8x32xf32>
    %32 = arith.addf %30, %31 : vector<8x32xf32>
    %33 = math.tanh %32 : vector<8x32xf32>
    %34 = arith.index_cast %28 : i32 to index
    %c0_20 = arith.constant 0 : index
    %35 = vector.load %arg8[%34, %c0_20] : memref<64x32xf32, #tpu.memory_space<vmem>>, vector<8x32xf32>
    tpu.vector_store %arg8[%34, %c0_20], %33 {strides = array<i32>} : memref<64x32xf32, #tpu.memory_space<vmem>>, vector<8x32xf32>,
    %c3_i32 = arith.constant 3 : i32
    %c8_i32_21 = arith.constant 8 : i32
    %36 = arith.muli %c3_i32, %c8_i32_21 : i32
    %37 = tpu.assume_multiple %36, 8 : i32
    %38 = arith.index_cast %37 : i32 to index
    %c0_22 = arith.constant 0 : index
    %39 = vector.load %arg8[%38, %c0_22] : memref<64x32xf32, #tpu.memory_space<vmem>>, vector<8x32xf32>
    %cst_23 = arith.constant dense<0.000000e+00> : vector<8x32xf32>
    %40 = tpu.matmul %33, %7, %cst_23 {dimension_numbers = #tpu.dot_dimension_numbers<[1], [0], [0], [1], [0, 0, 1, 1], [], []>} : vector<8x32xf32>, vector<32x32xf32>, vector<8x32xf32> -> vector<8x32xf32>
    %41 = arith.addf %39, %40 : vector<8x32xf32>
    %42 = math.tanh %41 : vector<8x32xf32>
    %43 = arith.index_cast %37 : i32 to index
    %c0_24 = arith.constant 0 : index
    %44 = vector.load %arg8[%43, %c0_24] : memref<64x32xf32, #tpu.memory_space<vmem>>, vector<8x32xf32>
    tpu.vector_store %arg8[%43, %c0_24], %42 {strides = array<i32>} : memref<64x32xf32, #tpu.memory_space<vmem>>, vector<8x32xf32>,
    %c4_i32 = arith.constant 4 : i32
    %c8_i32_25 = arith.constant 8 : i32
    %45 = arith.muli %c4_i32, %c8_i32_25 : i32
    %46 = tpu.assume_multiple %45, 8 : i32
    %47 = arith.index_cast %46 : i32 to index
    %c0_26 = arith.constant 0 : index
    %48 = vector.load %arg8[%47, %c0_26] : memref<64x32xf32, #tpu.memory_space<vmem>>, vector<8x32xf32>
    %cst_27 = arith.constant dense<0.000000e+00> : vector<8x32xf32>
    %49 = tpu.matmul %42, %7, %cst_27 {dimension_numbers = #tpu.dot_dimension_numbers<[1], [0], [0], [1], [0, 0, 1, 1], [], []>} : vector<8x32xf32>, vector<32x32xf32>, vector<8x32xf32> -> vector<8x32xf32>
    %50 = arith.addf %48, %49 : vector<8x32xf32>
    %51 = math.tanh %50 : vector<8x32xf32>
    %52 = arith.index_cast %46 : i32 to index
    %c0_28 = arith.constant 0 : index
    %53 = vector.load %arg8[%52, %c0_28] : memref<64x32xf32, #tpu.memory_space<vmem>>, vector<8x32xf32>
    tpu.vector_store %arg8[%52, %c0_28], %51 {strides = array<i32>} : memref<64x32xf32, #tpu.memory_space<vmem>>, vector<8x32xf32>,
    %c5_i32 = arith.constant 5 : i32
    %c8_i32_29 = arith.constant 8 : i32
    %54 = arith.muli %c5_i32, %c8_i32_29 : i32
    %55 = tpu.assume_multiple %54, 8 : i32
    %56 = arith.index_cast %55 : i32 to index
    %c0_30 = arith.constant 0 : index
    %57 = vector.load %arg8[%56, %c0_30] : memref<64x32xf32, #tpu.memory_space<vmem>>, vector<8x32xf32>
    %cst_31 = arith.constant dense<0.000000e+00> : vector<8x32xf32>
    %58 = tpu.matmul %51, %7, %cst_31 {dimension_numbers = #tpu.dot_dimension_numbers<[1], [0], [0], [1], [0, 0, 1, 1], [], []>} : vector<8x32xf32>, vector<32x32xf32>, vector<8x32xf32> -> vector<8x32xf32>
    %59 = arith.addf %57, %58 : vector<8x32xf32>
    %60 = math.tanh %59 : vector<8x32xf32>
    %61 = arith.index_cast %55 : i32 to index
    %c0_32 = arith.constant 0 : index
    %62 = vector.load %arg8[%61, %c0_32] : memref<64x32xf32, #tpu.memory_space<vmem>>, vector<8x32xf32>
    tpu.vector_store %arg8[%61, %c0_32], %60 {strides = array<i32>} : memref<64x32xf32, #tpu.memory_space<vmem>>, vector<8x32xf32>,
    %c6_i32 = arith.constant 6 : i32
    %c8_i32_33 = arith.constant 8 : i32
    %63 = arith.muli %c6_i32, %c8_i32_33 : i32
    %64 = tpu.assume_multiple %63, 8 : i32
    %65 = arith.index_cast %64 : i32 to index
    %c0_34 = arith.constant 0 : index
    %66 = vector.load %arg8[%65, %c0_34] : memref<64x32xf32, #tpu.memory_space<vmem>>, vector<8x32xf32>
    %cst_35 = arith.constant dense<0.000000e+00> : vector<8x32xf32>
    %67 = tpu.matmul %60, %7, %cst_35 {dimension_numbers = #tpu.dot_dimension_numbers<[1], [0], [0], [1], [0, 0, 1, 1], [], []>} : vector<8x32xf32>, vector<32x32xf32>, vector<8x32xf32> -> vector<8x32xf32>
    %68 = arith.addf %66, %67 : vector<8x32xf32>
    %69 = math.tanh %68 : vector<8x32xf32>
    %70 = arith.index_cast %64 : i32 to index
    %c0_36 = arith.constant 0 : index
    %71 = vector.load %arg8[%70, %c0_36] : memref<64x32xf32, #tpu.memory_space<vmem>>, vector<8x32xf32>
    tpu.vector_store %arg8[%70, %c0_36], %69 {strides = array<i32>} : memref<64x32xf32, #tpu.memory_space<vmem>>, vector<8x32xf32>,
    %c7_i32 = arith.constant 7 : i32
    %c8_i32_37 = arith.constant 8 : i32
    %72 = arith.muli %c7_i32, %c8_i32_37 : i32
    %73 = tpu.assume_multiple %72, 8 : i32
    %74 = arith.index_cast %73 : i32 to index
    %c0_38 = arith.constant 0 : index
    %75 = vector.load %arg8[%74, %c0_38] : memref<64x32xf32, #tpu.memory_space<vmem>>, vector<8x32xf32>
    %cst_39 = arith.constant dense<0.000000e+00> : vector<8x32xf32>
    %76 = tpu.matmul %69, %7, %cst_39 {dimension_numbers = #tpu.dot_dimension_numbers<[1], [0], [0], [1], [0, 0, 1, 1], [], []>} : vector<8x32xf32>, vector<32x32xf32>, vector<8x32xf32> -> vector<8x32xf32>
    %77 = arith.addf %75, %76 : vector<8x32xf32>
    %78 = math.tanh %77 : vector<8x32xf32>
    %79 = arith.index_cast %73 : i32 to index
    %c0_40 = arith.constant 0 : index
    %80 = vector.load %arg8[%79, %c0_40] : memref<64x32xf32, #tpu.memory_space<vmem>>, vector<8x32xf32>
    tpu.vector_store %arg8[%79, %c0_40], %78 {strides = array<i32>} : memref<64x32xf32, #tpu.memory_space<vmem>>, vector<8x32xf32>,
    %c8_i32_41 = arith.constant 8 : i32
    %c0_42 = arith.constant 0 : index
    %c0_43 = arith.constant 0 : index
    %81 = vector.load %arg8[%c0_42, %c0_43] : memref<64x32xf32, #tpu.memory_space<vmem>>, vector<64x32xf32>
    %c0_44 = arith.constant 0 : index
    %c0_45 = arith.constant 0 : index
    %82 = vector.load %arg5[%c0_44, %c0_45] : memref<32x8xf32, #tpu.memory_space<vmem>>, vector<32x8xf32>
    %cst_46 = arith.constant dense<0.000000e+00> : vector<64x8xf32>
    %83 = tpu.matmul %81, %82, %cst_46 {dimension_numbers = #tpu.dot_dimension_numbers<[1], [0], [0], [1], [0, 0, 1, 1], [], []>} : vector<64x32xf32>, vector<32x8xf32>, vector<64x8xf32> -> vector<64x8xf32>
    %c0_47 = arith.constant 0 : index
    %c0_48 = arith.constant 0 : index
    %84 = vector.load %arg6[%c0_47, %c0_48] : memref<1x8xf32, #tpu.memory_space<vmem>>, vector<1x8xf32>
    %85 = vector.broadcast %84 : vector<1x8xf32> to vector<64x8xf32>
    %86 = arith.addf %83, %85 : vector<64x8xf32>
    %c0_49 = arith.constant 0 : index
    %c0_50 = arith.constant 0 : index
    %87 = vector.load %arg7[%c0_49, %c0_50] : memref<64x8xf32, #tpu.memory_space<vmem>>, vector<64x8xf32>
    tpu.vector_store %arg7[%c0_49, %c0_50], %86 {strides = array<i32>} : memref<64x8xf32, #tpu.memory_space<vmem>>, vector<64x8xf32>,
    return
  }
  func.func @transform_0(%arg0: i32) -> (i32, i32) {
    %c0_i32 = arith.constant 0 : i32
    %c0_i32_0 = arith.constant 0 : i32
    %c0_i32_1 = arith.constant 0 : i32
    return %c0_i32, %c0_i32_0 : i32, i32
  }
  func.func @transform_1(%arg0: i32) -> (i32, i32) {
    %c0_i32 = arith.constant 0 : i32
    %c0_i32_0 = arith.constant 0 : i32
    %c0_i32_1 = arith.constant 0 : i32
    return %c0_i32, %c0_i32_0 : i32, i32
  }
  func.func @transform_2(%arg0: i32) -> (i32, i32) {
    %c0_i32 = arith.constant 0 : i32
    %c0_i32_0 = arith.constant 0 : i32
    %c0_i32_1 = arith.constant 0 : i32
    return %c0_i32, %c0_i32_0 : i32, i32
  }
  func.func @transform_3(%arg0: i32) -> (i32, i32) {
    %c0_i32 = arith.constant 0 : i32
    %c0_i32_0 = arith.constant 0 : i32
    %c0_i32_1 = arith.constant 0 : i32
    return %c0_i32, %c0_i32_0 : i32, i32
  }
  func.func @transform_4(%arg0: i32) -> (i32, i32) {
    %c0_i32 = arith.constant 0 : i32
    %c0_i32_0 = arith.constant 0 : i32
    %c0_i32_1 = arith.constant 0 : i32
    return %c0_i32, %c0_i32_0 : i32, i32
  }
  func.func @transform_5(%arg0: i32) -> (i32, i32) {
    %c0_i32 = arith.constant 0 : i32
    %c0_i32_0 = arith.constant 0 : i32
    %c0_i32_1 = arith.constant 0 : i32
    return %c0_i32, %c0_i32_0 : i32, i32
  }
  func.func @transform_6(%arg0: i32) -> (i32, i32) {
    %c0_i32 = arith.constant 0 : i32
    %c0_i32_0 = arith.constant 0 : i32
    %c0_i32_1 = arith.constant 0 : i32
    return %c0_i32, %c0_i32_0 : i32, i32
  }
}

</mosaic_0001>

<bundles_post_ra>
// kernel: sorting_classifier_forward.1
= control target key start
LH: loop header
LB: loop body
LE: loop exit
PB: predicated region body
PF: predicated region fallthrough
CT: control target
= control target key end

     0   :  { %vm37_vm0 = vcmask 130048   ;;  %v481_v8 = vmov 0.0   ;;  %vm103_vm1 = vcmask 261120   ;;  %vm420_vm2 = vcmask 64512   ;;  %s658_s1 = inlined_call_operand.vmem [shape: f32[16,32], index: 1, kind: input, shape index: {}]   ;;  %s659_s0 = inlined_call_operand.vmem [shape: f32[64,16], index: 0, kind: input, shape index: {}]   ;;  %s660_s2 = inlined_call_operand.vmem [shape: f32[32,32], index: 2, kind: input, shape index: {}]   ;;  %s661_s3 = inlined_call_operand.vmem [shape: f32[1,32], index: 3, kind: input, shape index: {}]   ;;  %s662_s4 = inlined_call_operand.vmem [shape: f32[32,8], index: 4, kind: input, shape index: {}]   ;;  %s663_s5 = inlined_call_operand.vmem [shape: f32[1,8], index: 5, kind: input, shape index: {}]   ;;  %s664_s6 = inlined_call_operand.vmem [shape: f32[64,8], index: 6, kind: output, shape index: {}]  }
   0x1   :  { %v32_v0 = vld [vmem:[%s658_s1 + $0x8] sm:$0xff]  ;;  %v31_v1 = vld [vmem:[%s658_s1] sm:$0xff]  ;;  %v30_v2 = vld [vmem:[%s659_s0 + $0x38] sm:$0xff] }
   0x2   :  { %456 = vmatpush.msra.mxu2 %v32_v0  ;;  %v115_v3 = vld [vmem:[%s660_s2 + $0x18] sm:$0xff]  ;;  %76 = vmatpush.msra.mxu0 %v32_v0  ;;  %v23_v4 = vld [vmem:[%s659_s0] sm:$0xff]  ;;  %v114_v5 = vld [vmem:[%s660_s2 + $0x10] sm:$0xff] }
   0x3   :  { %188 = vmatpush.msra.mxu3 %v115_v3  ;;  %216 = vmatpush.msra.mxu1 %v115_v3  ;;  %v113_v6 = vld [vmem:[%s660_s2 + $0x8] sm:$0xff]  ;;  %v112_v7 = vld [vmem:[%s660_s2] sm:$0xff]  ;;  %v25_v21 = vld [vmem:[%s659_s0 + $0x10] sm:$0xff] }
   0x4   :  { %457 = vmatpush.msra.mxu2 %v31_v1  ;;  %77 = vmatpush.msra.mxu0 %v31_v1  ;;  %v24_v9 = vld [vmem:[%s659_s0 + $0x8] sm:$0xff]  ;;  %v550_v10 = vld [vmem:[%s661_s3] ss:$0 sm:$0xff]  ;;  %v26_v26 = vld [vmem:[%s659_s0 + $0x18] sm:$0xff] }
   0x5   :  { %440 = vmatmul.msk.f32.vlgmr.msra.gmra.mxu2 %vm37_vm0, %v30_v2  ;;  %433 = vmatmul.msk.f32.vlgmr.msra.gmra.mxu0 %vm37_vm0, %v23_v4  ;;  %v27_v35 = vld [vmem:[%s659_s0 + $0x20] sm:$0xff]  ;;  %v28_v42 = vld [vmem:[%s659_s0 + $0x28] sm:$0xff]  ;;  %v350_v43 = vld [vmem:[%s662_s4 + $0x18] sm:$0xff] }
   0x6   :  { %132 = vmatpush.msrb.mxu2 %v115_v3  ;;  %189 = vmatpush.msra.mxu3 %v114_v5  ;;  %v349_v44 = vld [vmem:[%s662_s4 + $0x10] sm:$0xff]  ;;  %v348_v45 = vld [vmem:[%s662_s4 + $0x8] sm:$0xff]  ;;  %v347_v46 = vld [vmem:[%s662_s4] sm:$0xff] }
   0x7   :  { %217 = vmatpush.msra.mxu1 %v114_v5  ;;  %v29_v52 = vld [vmem:[%s659_s0 + $0x30] sm:$0xff]  ;;  %v464_v58 = vld [vmem:[%s663_s5] ss:$0 sm:$0xff] }
   0x8   :  { %133 = vmatpush.msrb.mxu2 %v114_v5  ;;  %190 = vmatpush.msra.mxu3 %v113_v6 }
   0x9   :  { %218 = vmatpush.msra.mxu1 %v113_v6 }
   0xa   :  { %134 = vmatpush.msrb.mxu2 %v113_v6  ;;  %191 = vmatpush.msra.mxu3 %v112_v7 }
   0xb   :  { %219 = vmatpush.msra.mxu1 %v112_v7 }
   0xc   :  { %272 = vmatpush.msrb.mxu3 %v115_v3  ;;  %135 = vmatpush.msrb.mxu2 %v112_v7 }
   0xd   :  { %300 = vmatpush.msrb.mxu1 %v115_v3  ;;  %136 = vmatmul.f32.vlgmr.msrb.gmra.mxu2 %v481_v8 }
   0xe   :  { %273 = vmatpush.msrb.mxu3 %v114_v5  ;;  %160 = vmatpush.msra.mxu2 %v115_v3 }
   0xf   :  { %301 = vmatpush.msrb.mxu1 %v114_v5  ;;  %434 = vmatmul.msk.f32.gmra.mxu0 %vm37_vm0, %v24_v9 }
  0x10   :  { %274 = vmatpush.msrb.mxu3 %v113_v6  ;;  %161 = vmatpush.msra.mxu2 %v114_v5 }
  0x11   :  { %302 = vmatpush.msrb.mxu1 %v113_v6 }
  0x12   :  { %275 = vmatpush.msrb.mxu3 %v112_v7  ;;  %162 = vmatpush.msra.mxu2 %v113_v6 }
  0x13   :  { %303 = vmatpush.msrb.mxu1 %v112_v7 }
  0x14   :  { %163 = vmatpush.msra.mxu2 %v112_v7 }
  0x16   :  { %244 = vmatpush.msrb.mxu2 %v115_v3 }
  0x17   :  { %435 = vmatmul.msk.f32.gmra.mxu0 %vm37_vm0, %v25_v21 }
  0x18   :  { %245 = vmatpush.msrb.mxu2 %v114_v5 }
  0x1a   :  { %246 = vmatpush.msrb.mxu2 %v113_v6 }
  0x1c   :  { %247 = vmatpush.msrb.mxu2 %v112_v7 }
  0x1f   :  { %436 = vmatmul.msk.f32.gmra.mxu0 %vm37_vm0, %v26_v26 }
  0x27   :  { %437 = vmatmul.msk.f32.gmra.mxu0 %vm37_vm0, %v27_v35 }
  0x2f   :  { %438 = vmatmul.msk.f32.gmra.mxu0 %vm37_vm0, %v28_v42 }
  0x37   :  { %439 = vmatmul.msk.f32.gmra.mxu0 %vm37_vm0, %v29_v52 }
  0x82   :  { %v79_v11 = vpop.f32.mrf.mxu0 }
  0x83   :  { %v80_v12 = vadd.f32 %v550_v10, %v79_v11 }
  0x85   :  { %104 = vst.msk [vmem:[#allocation2] sm:$0xff] %vm103_vm1, %v80_v12 }
  0x88   :  { %v100_v13 = vpop.f32.mrf.mxu2 }
  0x89   :  { %v101_v14 = vadd.f32 %v550_v10, %v100_v13 }
  0x8b   :  { %111 = vst.msk [vmem:[#allocation2 + $0x38] sm:$0xff] %vm103_vm1, %v101_v14 }
  0x8c   :  { %v116_v15 = vld [vmem:[#allocation2] sm:$0xff]  ;;  %v82_v19 = vpop.f32.mrf.mxu0 }
  0x8d   :  { %v83_v20 = vadd.f32 %v550_v10, %v82_v19 }
  0x8f   :  { %105 = vst.msk [vmem:[#allocation2 + $0x8] sm:$0xff] %vm103_vm1, %v83_v20 }
  0x90   :  { %v137_v16 = vpop.f32.mrf.mxu2 }
  0x91   :  { %v140_v17 = vadd.f32 %v137_v16, %v116_v15 }
  0x92   :  { %v312_v20 = vld [vmem:[#allocation2 + $0x38] sm:$0xff] }
  0x93   :  { %465 = vtanh.f32 %v140_v17 }
  0x94   :  { %v85_v27 = vpop.f32.mrf.mxu0 }
  0x95   :  { %v86_v28 = vadd.f32 %v550_v10, %v85_v27 }
  0x96   :  { %v144_v22 = vld [vmem:[#allocation2 + $0x8] sm:$0xff] }
  0x97   :  { %106 = vst.msk [vmem:[#allocation2 + $0x10] sm:$0xff] %vm103_vm1, %v86_v28 }
  0x99   :  { %v466_v18 = vpop.eup %465 }
  0x9a   :  { %142 = vst.msk [vmem:[#allocation2] sm:$0xff] %vm103_vm1, %v466_v18  ;;  %441 = vmatmul.msk.f32.vlgmr.msra.gmra.mxu2 %vm103_vm1, %v466_v18 }
  0x9b   :  { %328 = vmatpush.msra.mxu2 %v115_v3 }
  0x9c   :  { %v88_v33 = vpop.f32.mrf.mxu0 }
  0x9d   :  { %329 = vmatpush.msra.mxu2 %v114_v5  ;;  %v89_v34 = vadd.f32 %v550_v10, %v88_v33 }
  0x9e   :  { %v172_v29 = vld [vmem:[#allocation2 + $0x10] sm:$0xff] }
  0x9f   :  { %330 = vmatpush.msra.mxu2 %v113_v6  ;;  %107 = vst.msk [vmem:[#allocation2 + $0x18] sm:$0xff] %vm103_vm1, %v89_v34 }
  0xa1   :  { %331 = vmatpush.msra.mxu2 %v112_v7  ;;  %v339_v62 = vld [vmem:[#allocation2] sm:$0xff] }
  0xa4   :  { %v91_v40 = vpop.f32.mrf.mxu0 }
  0xa5   :  { %v92_v41 = vadd.f32 %v550_v10, %v91_v40 }
  0xa6   :  { %v200_v36 = vld [vmem:[#allocation2 + $0x18] sm:$0xff] }
  0xa7   :  { %108 = vst.msk [vmem:[#allocation2 + $0x20] sm:$0xff] %vm103_vm1, %v92_v41 }
  0xac   :  { %v94_v53 = vpop.f32.mrf.mxu0 }
  0xad   :  { %v95_v54 = vadd.f32 %v550_v10, %v94_v53 }
  0xae   :  { %v228_v47 = vld [vmem:[#allocation2 + $0x20] sm:$0xff] }
  0xaf   :  { %109 = vst.msk [vmem:[#allocation2 + $0x28] sm:$0xff] %vm103_vm1, %v95_v54 }
  0xb4   :  { %v97_v3 = vpop.f32.mrf.mxu0 }
  0xb5   :  { %v98_v4 = vadd.f32 %v550_v10, %v97_v3 }
  0xb6   :  { %v256_v55 = vld [vmem:[#allocation2 + $0x28] sm:$0xff] }
  0xb7   :  { %110 = vst.msk [vmem:[#allocation2 + $0x30] sm:$0xff] %vm103_vm1, %v98_v4 }
  0xbe   :  { %v284_v5 = vld [vmem:[#allocation2 + $0x30] sm:$0xff] }
 0x11d   :  { %v165_v23 = vpop.f32.mrf.mxu2 }
 0x11e   :  { %v168_v24 = vadd.f32 %v165_v23, %v144_v22 }
 0x120   :  { %467 = vtanh.f32 %v168_v24 }
 0x126   :  { %v468_v25 = vpop.eup %467 }
 0x127   :  { %170 = vst.msk [vmem:[#allocation2 + $0x8] sm:$0xff] %vm103_vm1, %v468_v25  ;;  %442 = vmatmul.msk.f32.vlgmr.msra.gmra.mxu3 %vm103_vm1, %v468_v25 }
 0x128   :  { %458 = vmatpush.msra.mxu3 %v350_v43 }
 0x12a   :  { %459 = vmatpush.msra.mxu3 %v349_v44 }
 0x12c   :  { %460 = vmatpush.msra.mxu3 %v348_v45 }
 0x12e   :  { %461 = vmatpush.msra.mxu3 %v347_v46  ;;  %v340_v0 = vld [vmem:[#allocation2 + $0x8] sm:$0xff] }
 0x1aa   :  { %v193_v30 = vpop.f32.mrf.mxu3 }
 0x1ab   :  { %v196_v31 = vadd.f32 %v193_v30, %v172_v29 }
 0x1ad   :  { %469 = vtanh.f32 %v196_v31 }
 0x1b3   :  { %v470_v32 = vpop.eup %469 }
 0x1b4   :  { %198 = vst.msk [vmem:[#allocation2 + $0x10] sm:$0xff] %vm103_vm1, %v470_v32  ;;  %443 = vmatmul.msk.f32.vlgmr.msra.gmra.mxu1 %vm103_vm1, %v470_v32 }
 0x1b5   :  { %391 = vmatpush.msra.mxu1 %v350_v43 }
 0x1b7   :  { %392 = vmatpush.msra.mxu1 %v349_v44 }
 0x1b9   :  { %393 = vmatpush.msra.mxu1 %v348_v45 }
 0x1bb   :  { %394 = vmatpush.msra.mxu1 %v347_v46  ;;  %v341_v1 = vld [vmem:[#allocation2 + $0x10] sm:$0xff] }
 0x231   :  { %v221_v37 = vpop.f32.mrf.mxu1 }
 0x232   :  { %v224_v38 = vadd.f32 %v221_v37, %v200_v36 }
 0x234   :  { %471 = vtanh.f32 %v224_v38 }
 0x23a   :  { %v472_v39 = vpop.eup %471 }
 0x23b   :  { %226 = vst.msk [vmem:[#allocation2 + $0x18] sm:$0xff] %vm103_vm1, %v472_v39  ;;  %444 = vmatmul.msk.f32.vlgmr.msrb.gmra.mxu2 %vm103_vm1, %v472_v39 }
 0x242   :  { %v342_v2 = vld [vmem:[#allocation2 + $0x18] sm:$0xff] }
 0x2be   :  { %v249_v48 = vpop.f32.mrf.mxu2 }
 0x2bf   :  { %v252_v49 = vadd.f32 %v249_v48, %v228_v47 }
 0x2c1   :  { %473 = vtanh.f32 %v252_v49 }
 0x2c7   :  { %v474_v50 = vpop.eup %473 }
 0x2c8   :  { %254 = vst.msk [vmem:[#allocation2 + $0x20] sm:$0xff] %vm103_vm1, %v474_v50  ;;  %445 = vmatmul.msk.f32.vlgmr.msrb.gmra.mxu3 %vm103_vm1, %v474_v50 }
 0x2cf   :  { %v343_v51 = vld [vmem:[#allocation2 + $0x20] sm:$0xff] }
 0x2d0   :  { %452 = vmatmul.msk.f32.vlgmr.msra.gmra.mxu3 %vm103_vm1, %v343_v51 }
 0x34b   :  { %v277_v56 = vpop.f32.mrf.mxu3 }
 0x34c   :  { %v280_v57 = vadd.f32 %v277_v56, %v256_v55 }
 0x34e   :  { %475 = vtanh.f32 %v280_v57 }
 0x353   :  { %v408_v59 = vpop.f32.mrf.mxu3 }
 0x354   :  { %v476_v60 = vpop.eup %475  ;;  %v409_v61 = vadd.f32 %v464_v58, %v408_v59 }
 0x355   :  { %282 = vst.msk [vmem:[#allocation2 + $0x28] sm:$0xff] %vm103_vm1, %v476_v60  ;;  %446 = vmatmul.msk.f32.vlgmr.msrb.gmra.mxu1 %vm103_vm1, %v476_v60 }
 0x356   :  { %425 = vst.msk [vmem:[%s664_s6 + $0x20] sm:$0xff] %vm420_vm2, %v409_v61 }
 0x35c   :  { %v344_v63 = vld [vmem:[#allocation2 + $0x28] sm:$0xff] }
 0x35d   :  { %448 = vmatmul.msk.f32.vlgmr.msra.gmra.mxu1 %vm103_vm1, %v339_v62  ;;  %453 = vmatmul.msk.f32.gmra.mxu3 %vm103_vm1, %v344_v63 }
 0x365   :  { %449 = vmatmul.msk.f32.gmra.mxu1 %vm103_vm1, %v340_v0 }
 0x36d   :  { %450 = vmatmul.msk.f32.gmra.mxu1 %vm103_vm1, %v341_v1 }
 0x375   :  { %451 = vmatmul.msk.f32.gmra.mxu1 %vm103_vm1, %v342_v2 }
 0x3d2   :  { %v305_v6 = vpop.f32.mrf.mxu1 }
 0x3d3   :  { %v308_v7 = vadd.f32 %v305_v6, %v284_v5 }
 0x3d5   :  { %477 = vtanh.f32 %v308_v7 }
 0x3da   :  { %v396_v8 = vpop.f32.mrf.mxu1 }
 0x3db   :  { %v478_v9 = vpop.eup %477  ;;  %v397_v11 = vadd.f32 %v464_v58, %v396_v8 }
 0x3dc   :  { %310 = vst.msk [vmem:[#allocation2 + $0x30] sm:$0xff] %vm103_vm1, %v478_v9  ;;  %447 = vmatmul.msk.f32.vlgmr.msra.gmra.mxu2 %vm103_vm1, %v478_v9 }
 0x3dd   :  { %421 = vst.msk [vmem:[%s664_s6] sm:$0xff] %vm420_vm2, %v397_v11 }
 0x3e0   :  { %v411_v12 = vpop.f32.mrf.mxu3 }
 0x3e1   :  { %v412_v10 = vadd.f32 %v464_v58, %v411_v12 }
 0x3e2   :  { %v399_v13 = vpop.f32.mrf.mxu1 }
 0x3e3   :  { %426 = vst.msk [vmem:[%s664_s6 + $0x28] sm:$0xff] %vm420_vm2, %v412_v10  ;;  %v400_v14 = vadd.f32 %v464_v58, %v399_v13  ;;  %v345_v15 = vld [vmem:[#allocation2 + $0x30] sm:$0xff] }
 0x3e4   :  { %454 = vmatmul.msk.f32.gmra.mxu3 %vm103_vm1, %v345_v15 }
 0x3e5   :  { %422 = vst.msk [vmem:[%s664_s6 + $0x8] sm:$0xff] %vm420_vm2, %v400_v14 }
 0x3ea   :  { %v402_v16 = vpop.f32.mrf.mxu1 }
 0x3eb   :  { %v403_v17 = vadd.f32 %v464_v58, %v402_v16 }
 0x3ed   :  { %423 = vst.msk [vmem:[%s664_s6 + $0x10] sm:$0xff] %vm420_vm2, %v403_v17 }
 0x3f2   :  { %v405_v18 = vpop.f32.mrf.mxu1 }
 0x3f3   :  { %v406_v19 = vadd.f32 %v464_v58, %v405_v18 }
 0x3f5   :  { %424 = vst.msk [vmem:[%s664_s6 + $0x18] sm:$0xff] %vm420_vm2, %v406_v19 }
 0x45f   :  { %v333_v21 = vpop.f32.mrf.mxu2 }
 0x460   :  { %v336_v22 = vadd.f32 %v333_v21, %v312_v20 }
 0x462   :  { %479 = vtanh.f32 %v336_v22 }
 0x467   :  { %v414_v23 = vpop.f32.mrf.mxu3 }
 0x468   :  { %v480_v24 = vpop.eup %479  ;;  %v415_v25 = vadd.f32 %v464_v58, %v414_v23 }
 0x469   :  { %338 = vst.msk [vmem:[#allocation2 + $0x38] sm:$0xff] %vm103_vm1, %v480_v24 }
 0x46a   :  { %427 = vst.msk [vmem:[%s664_s6 + $0x30] sm:$0xff] %vm420_vm2, %v415_v25 }
 0x470   :  { %v346_v26 = vld [vmem:[#allocation2 + $0x38] sm:$0xff] }
 0x471   :  { %455 = vmatmul.msk.f32.gmra.mxu3 %vm103_vm1, %v346_v26 }
 0x4f4   :  { %v417_v27 = vpop.f32.mrf.mxu3 }
 0x4f5   :  { %v418_v28 = vadd.f32 %v464_v58, %v417_v27 }
 0x4f7   :  { %428 = vst.msk [vmem:[%s664_s6 + $0x38] sm:$0xff] %vm420_vm2, %v418_v28 }

</bundles_post_ra>
